<compile_context>
chip_gen: v6e
topology: v6e:2x2x1
jax: 0.10.0
libtpu: 0.0.40
codegen_flags: <defaults>
</compile_context>

<pallas_src>
import functools

import jax
import jax.numpy as jnp
from jax.experimental import pallas as pl
from jax.experimental.pallas import tpu as pltpu


def _round_up(x, m):
    return (x + m - 1) // m * m


def gau_kernel(supp_ref, query_ref, bg_ref, w3_ref, wf_ref, bf_ref,
               *out_refs, matmul_dtype):
    out_ref = out_refs[0]
    attn_ref = out_refs[1] if len(out_refs) > 1 else None

    Bt, hw, d = supp_ref.shape
    Cp = wf_ref.shape[1]                               # padded channel dim (x128)
    mdt = jnp.float32 if matmul_dtype is None else matmul_dtype

    def mm(a, b):
        return jnp.dot(a.astype(mdt), b.astype(mdt),
                       preferred_element_type=jnp.float32)

    # ---- fused projections: one (Bt*hw, d) @ (d, 3Cp) matmul per stream ----
    xs = supp_ref[...].reshape(Bt * hw, d)
    xq = query_ref[...].reshape(Bt * hw, d)
    w3 = w3_ref[...]                                   # [Wk | Wq | Wv], each 128-lane slot

    proj_s = mm(xs, w3)                                # (Bt*hw, 3Cp)
    proj_q = mm(xq, w3)                                # (Bt*hw, 3Cp)

    # 128-lane-aligned slices: no cross-lane repack
    k = proj_s[:, 0 * Cp:1 * Cp].reshape(Bt, hw, Cp)
    v_supp = proj_s[:, 2 * Cp:3 * Cp].reshape(Bt, hw, Cp)
    q = proj_q[:, 1 * Cp:2 * Cp].reshape(Bt, hw, Cp)
    v_query = proj_q[:, 2 * Cp:3 * Cp]                 # (Bt*hw, Cp), kept flat

    # ---- attention: last-dim/last-dim contraction, no explicit k.T ---------
    # (zero-padded channels contribute nothing to the contraction)
    logits = jnp.einsum("bqc,bkc->bqk", q.astype(mdt), k.astype(mdt),
                        preferred_element_type=jnp.float32)   # (Bt, hw, hw)
    logits = logits + bg_ref[...]                             # (Bt, 1, hw) bcast

    # numerically stable softmax (f32)
    logits = logits - jnp.max(logits, axis=-1, keepdims=True)
    p = jnp.exp(logits)
    denom = jnp.sum(p, axis=-1, keepdims=True)
    # exact reciprocal when attn is an output (exact probabilities);
    # approx EUP reciprocal (separate slot, ~free) on the fast path.
    p = p * pl.reciprocal(denom, approx=(attn_ref is None))

    out = jnp.einsum("bqk,bkc->bqc", p.astype(mdt), v_supp.astype(mdt),
                     preferred_element_type=jnp.float32)      # (Bt, hw, Cp)

    # ---- final 1x1 conv: [out | v_query] @ Wf + bf, kept as two dots -------
    # (lane-dim concat would cost a shuffle; two half-Wf dots are free on MXU)
    y = (mm(out.reshape(Bt * hw, Cp), wf_ref[:Cp, :])
         + mm(v_query, wf_ref[Cp:, :])
         + bf_ref[...])
    out_ref[...] = jnp.maximum(y, 0.0).reshape(Bt, hw, Cp)    # lane-dense store

    if attn_ref is not None:
        attn_ref[...] = p.astype(attn_ref.dtype)


def _bilinear_align_corners(x, out_h, out_w):
    """F.interpolate(..., mode='bilinear', align_corners=True) equivalent.
    x: (b, c, H, W) float32 -> (b, c, out_h, out_w)."""
    b, c, H, W = x.shape
    ys = jnp.linspace(0.0, H - 1.0, out_h) if out_h > 1 else jnp.zeros((out_h,), jnp.float32)
    xs = jnp.linspace(0.0, W - 1.0, out_w) if out_w > 1 else jnp.zeros((out_w,), jnp.float32)
    y0 = jnp.clip(jnp.floor(ys).astype(jnp.int32), 0, H - 1)
    y1 = jnp.clip(y0 + 1, 0, H - 1)
    x0 = jnp.clip(jnp.floor(xs).astype(jnp.int32), 0, W - 1)
    x1 = jnp.clip(x0 + 1, 0, W - 1)
    wy = (ys - y0.astype(jnp.float32))[None, None, :, None]
    wx = (xs - x0.astype(jnp.float32))[None, None, None, :]
    g = lambda yi, xi: x[:, :, yi, :][:, :, :, xi]
    top = g(y0, x0) * (1.0 - wx) + g(y0, x1) * wx
    bot = g(y1, x0) * (1.0 - wx) + g(y1, x1) * wx
    return top * (1.0 - wy) + bot * wy


def _auto_batch_tile(b, hw):
    """Pick Bt so the grid has >= 2 steps (megacore / pipeline overlap) while
    targeting Bt*hw >= 256 MXU rows when b allows it."""
    divisors = [t for t in range(1, b + 1) if b % t == 0]
    cands = [t for t in divisors if b // t >= 2] or [b]
    for t in cands:                     # ascending: smallest Bt reaching 256 rows
        if t * hw >= 256:
            return t
    return cands[-1]


def _padded_bytes(shape, itemsize=4):
    """VMEM footprint of a tile with (8, 128) sublane/lane padding."""
    s = list(shape)
    s[-1] = _round_up(s[-1], 128)
    if len(s) >= 2:
        s[-2] = _round_up(s[-2], 8)
    n = 1
    for x in s:
        n *= x
    return n * itemsize


def _vmem_limit_bytes(Bt, hw, d, Cp, return_attn, attn_itemsize):
    pb = _padded_bytes
    # double-buffered pipeline blocks
    blocks = (pb((Bt, hw, d)) * 2          # supp + query tokens
              + pb((Bt, 1, hw))            # bg suppression
              + pb((d, 3 * Cp))            # packed projection weights
              + pb((2 * Cp, Cp))           # Wf
              + pb((1, Cp))                # bf
              + pb((Bt, hw, Cp)))          # main output
    if return_attn:
        blocks += pb((Bt, hw, hw), attn_itemsize)
    blocks *= 2                            # double buffering
    # live in-kernel intermediates (proj_s/q, logits, p, out, y) with margin
    live = (2 * pb((Bt * hw, 3 * Cp))
            + 2 * pb((Bt, hw, hw))
            + 2 * pb((Bt * hw, Cp)))
    est = blocks + 2 * live
    # clamp: >= 32 MiB (plenty of headroom), <= 64 MiB so it is valid on v7x
    return int(min(max(est, 32 << 20), 64 << 20))


def gau_forward(feat_supp, feat_query, mask_supp, params, *,
                batch_tile=None, return_attn=True,
                matmul_dtype=jnp.bfloat16, attn_dtype=jnp.float32):
    """feat_supp/feat_query: (b, d, h, w) NCHW f32.  mask_supp: (b, 1, Hm, Wm).
    Returns (attnedfeat_query (b, C, h, w), attn (b, h, w, h, w) or None).

    batch_tile:   batch elements per grid step; None -> auto (>=2 grid steps,
                  targeting Bt*hw >= 256 MXU rows).
    return_attn:  drop the hw*hw attention output (dominant HBM writeback)
                  when downstream only needs attnedfeat_query.
    matmul_dtype: bf16 by default (MXU-native on v5e/v6e/v7x, f32 accumulation).
    attn_dtype:   dtype of the returned attention map (bf16 halves writeback
                  bytes, useful on v5e)."""
    b, d, h, w = feat_supp.shape
    hw = h * w
    C = params["w_k"].shape[1]
    Cp = _round_up(C, 128)

    if batch_tile is not None and b % batch_tile == 0:
        Bt = batch_tile
    else:
        Bt = _auto_batch_tile(b, hw)

    # NCHW -> (b, hw, d) token layout (glue)
    supp_t = jnp.transpose(feat_supp, (0, 2, 3, 1)).reshape(b, hw, d)
    query_t = jnp.transpose(feat_query, (0, 2, 3, 1)).reshape(b, hw, d)

    # suppress_bg_attn glue: bilinear resize + (1 - mask) * -999 -> (b, 1, hw)
    fg = _bilinear_align_corners(mask_supp.astype(jnp.float32), h, w)
    bg = ((1.0 - fg) * -999.0).reshape(b, 1, hw)

    # pack projection weights: [Wk | Wq | Wv], each padded to its own
    # 128-lane column slot -> (d, 3*Cp); all in-kernel slices are vreg-aligned.
    pad_c = lambda wm: jnp.pad(wm, ((0, 0), (0, Cp - C)))
    w3 = jnp.concatenate(
        [pad_c(params["w_k"]), pad_c(params["w_q"]), pad_c(params["w_v"])], axis=1)
    # Wf split into [top; bottom] halves, each zero-padded to (Cp, Cp)
    wf_top = jnp.pad(params["w_f"][:C, :], ((0, Cp - C), (0, Cp - C)))
    wf_bot = jnp.pad(params["w_f"][C:, :], ((0, Cp - C), (0, Cp - C)))
    wf = jnp.concatenate([wf_top, wf_bot], axis=0)          # (2*Cp, Cp)
    bf = jnp.pad(params["b_f"], (0, Cp - C)).reshape(1, Cp)

    out_shapes = [jax.ShapeDtypeStruct((b, hw, Cp), jnp.float32)]
    out_specs = [pl.BlockSpec((Bt, hw, Cp), lambda i: (i, 0, 0))]
    if return_attn:
        out_shapes.append(jax.ShapeDtypeStruct((b, hw, hw), attn_dtype))
        out_specs.append(pl.BlockSpec((Bt, hw, hw), lambda i: (i, 0, 0)))

    vmem_limit = _vmem_limit_bytes(Bt, hw, d, Cp, return_attn,
                                   jnp.dtype(attn_dtype).itemsize)

    kernel = functools.partial(gau_kernel, matmul_dtype=matmul_dtype)

    results = pl.pallas_call(
        kernel,
        out_shape=tuple(out_shapes),
        grid_spec=pltpu.PrefetchScalarGridSpec(
            num_scalar_prefetch=0,
            grid=(b // Bt,),
            in_specs=[
                pl.BlockSpec((Bt, hw, d), lambda i: (i, 0, 0)),   # supp tokens
                pl.BlockSpec((Bt, hw, d), lambda i: (i, 0, 0)),   # query tokens
                pl.BlockSpec((Bt, 1, hw), lambda i: (i, 0, 0)),   # bg suppression
                pl.BlockSpec((d, 3 * Cp), lambda i: (0, 0)),      # [Wk|Wq|Wv]
                pl.BlockSpec((2 * Cp, Cp), lambda i: (0, 0)),     # Wf
                pl.BlockSpec((1, Cp), lambda i: (0, 0)),          # bf
            ],
            out_specs=out_specs,
        ),
        compiler_params=pltpu.CompilerParams(
            dimension_semantics=("parallel",),
            vmem_limit_bytes=vmem_limit),
    )(supp_t, query_t, bg, w3, wf, bf)

    out_t = results[0]                                          # (b, hw, Cp)
    y = out_t.reshape(b, h, w, Cp)[..., :C]
    attnedfeat_query = jnp.transpose(y, (0, 3, 1, 2))
    if return_attn:
        attn = results[1].reshape(b, h, w, h, w)
        return attnedfeat_query, attn
    return attnedfeat_query, None


def _reference(feat_supp, feat_query, mask_supp, params):
    """Pure-JAX reference matching the PyTorch forward."""
    b, d, h, w = feat_supp.shape
    hw = h * w
    C = params["w_k"].shape[1]
    supp_t = jnp.transpose(feat_supp, (0, 2, 3, 1)).reshape(b, hw, d)
    query_t = jnp.transpose(feat_query, (0, 2, 3, 1)).reshape(b, hw, d)
    k = supp_t @ params["w_k"]
    q = query_t @ params["w_q"]
    v_s = supp_t @ params["w_v"]
    v_q = query_t @ params["w_v"]
    fg = _bilinear_align_corners(mask_supp.astype(jnp.float32), h, w)
    bg = ((1.0 - fg) * -999.0).reshape(b, 1, hw)
    attn = jnp.einsum("bqc,bkc->bqk", q, k) + bg
    attn = jax.nn.softmax(attn, axis=-1)
    out = jnp.einsum("bqk,bkc->bqc", attn, v_s)
    cat = jnp.concatenate([out, v_q], axis=-1)
    y = jax.nn.relu(cat @ params["w_f"] + params["b_f"][None, None, :])
    y = jnp.transpose(y.reshape(b, h, w, C), (0, 3, 1, 2))
    return y, attn.reshape(b, h, w, h, w)


if __name__ == "__main__":
    # small shapes consistent with the module (inchannel->outchannel 1x1 convs)
    b, d, C = 2, 32, 16
    h = w = 8
    mask_hw = 16

    key = jax.random.PRNGKey(0)
    ks = jax.random.split(key, 8)
    feat_supp = jax.random.normal(ks[0], (b, d, h, w), jnp.float32)
    feat_query = jax.random.normal(ks[1], (b, d, h, w), jnp.float32)
    mask_supp = (jax.random.uniform(ks[2], (b, 1, mask_hw, mask_hw)) > 0.5).astype(jnp.float32)

    params = {
        "w_k": 0.05 * jax.random.normal(ks[3], (d, C), jnp.float32),      # supp_linear
        "w_q": 0.05 * jax.random.normal(ks[4], (d, C), jnp.float32),      # query_linear
        "w_v": 0.05 * jax.random.normal(ks[5], (d, C), jnp.float32),      # shared_LPF (1x1 conv)
        "w_f": 0.05 * jax.random.normal(ks[6], (2 * C, C), jnp.float32),  # final_linear weight
        "b_f": 0.05 * jax.random.normal(ks[7], (C,), jnp.float32),        # final_linear bias
    }

    ref_out, ref_attn = _reference(feat_supp, feat_query, mask_supp, params)

    # 1) exactness check: f32 matmuls, exact softmax reciprocal
    out_f32, attn_f32 = gau_forward(feat_supp, feat_query, mask_supp, params,
                                    matmul_dtype=jnp.float32, return_attn=True)
    jax.block_until_ready((out_f32, attn_f32))
    assert out_f32.shape == (b, C, h, w) and attn_f32.shape == (b, h, w, h, w)
    assert jnp.allclose(out_f32, ref_out, rtol=1e-3, atol=1e-3)
    assert jnp.allclose(attn_f32, ref_attn, rtol=1e-3, atol=1e-3)

    # 2) default fast path: bf16 matmuls (f32 accumulation), auto batch tile
    out_bf, attn_bf = gau_forward(feat_supp, feat_query, mask_supp, params,
                                  return_attn=True)
    jax.block_until_ready((out_bf, attn_bf))
    assert jnp.allclose(out_bf, ref_out, rtol=3e-2, atol=3e-2)
    assert jnp.allclose(attn_bf, ref_attn, rtol=3e-2, atol=3e-2)

    # 3) no-attn fast path (drops the hw*hw HBM writeback, approx reciprocal)
    out2, none_attn = gau_forward(feat_supp, feat_query, mask_supp, params,
                                  return_attn=False)
    jax.block_until_ready(out2)
    assert none_attn is None
    assert jnp.allclose(out2, ref_out, rtol=3e-2, atol=3e-2)

    print("KERNEL_OK")
</pallas_src>

<mosaic_0001>
module attributes {stable_mosaic.version = 11 : i64} {
  func.func @gau_kernel(%arg0: i32, %arg1: memref<1x64x32xf32, #tpu.memory_space<vmem>>, %arg2: memref<1x64x32xf32, #tpu.memory_space<vmem>>, %arg3: memref<1x1x64xf32, #tpu.memory_space<vmem>>, %arg4: memref<32x384xf32, #tpu.memory_space<vmem>>, %arg5: memref<256x128xf32, #tpu.memory_space<vmem>>, %arg6: memref<1x128xf32, #tpu.memory_space<vmem>>, %arg7: memref<1x64x128xf32, #tpu.memory_space<vmem>>, %arg8: memref<1x64x64xf32, #tpu.memory_space<vmem>>) attributes {dimension_semantics = [#tpu.dimension_semantics<parallel>], iteration_bounds = array<i64: 2>, scalar_prefetch = 0 : i64, scratch_operands = 0 : i64, tpu.core_type = #tpu.core_type<tc>, window_params = [{transform_indices = @transform_0, window_bounds = array<i64: 1, 64, 32>}, {transform_indices = @transform_1, window_bounds = array<i64: 1, 64, 32>}, {transform_indices = @transform_2, window_bounds = array<i64: 1, 1, 64>}, {pipeline_mode = #tpu.pipeline_mode<synchronous>, transform_indices = @transform_3, window_bounds = array<i64: 32, 384>}, {pipeline_mode = #tpu.pipeline_mode<synchronous>, transform_indices = @transform_4, window_bounds = array<i64: 256, 128>}, {pipeline_mode = #tpu.pipeline_mode<synchronous>, transform_indices = @transform_5, window_bounds = array<i64: 1, 128>}, {transform_indices = @transform_6, window_bounds = array<i64: 1, 64, 128>}, {transform_indices = @transform_7, window_bounds = array<i64: 1, 64, 64>}]} {
    %c0 = arith.constant 0 : index
    %c0_0 = arith.constant 0 : index
    %c0_1 = arith.constant 0 : index
    %0 = vector.load %arg1[%c0, %c0_0, %c0_1] : memref<1x64x32xf32, #tpu.memory_space<vmem>>, vector<1x64x32xf32>
    %1 = vector.shape_cast %0 : vector<1x64x32xf32> to vector<64x32xf32>
    %c0_2 = arith.constant 0 : index
    %c0_3 = arith.constant 0 : index
    %c0_4 = arith.constant 0 : index
    %2 = vector.load %arg2[%c0_2, %c0_3, %c0_4] : memref<1x64x32xf32, #tpu.memory_space<vmem>>, vector<1x64x32xf32>
    %3 = vector.shape_cast %2 : vector<1x64x32xf32> to vector<64x32xf32>
    %c0_5 = arith.constant 0 : index
    %c0_6 = arith.constant 0 : index
    %4 = vector.load %arg4[%c0_5, %c0_6] : memref<32x384xf32, #tpu.memory_space<vmem>>, vector<32x384xf32>
    %cst = arith.constant dense<0.000000e+00> : vector<64x384xf32>
    %5 = tpu.matmul %1, %4, %cst {dimension_numbers = #tpu.dot_dimension_numbers<[1], [0], [0], [1], [0, 0, 1, 1], [], []>} : vector<64x32xf32>, vector<32x384xf32>, vector<64x384xf32> -> vector<64x384xf32>
    %cst_7 = arith.constant dense<0.000000e+00> : vector<64x384xf32>
    %6 = tpu.matmul %3, %4, %cst_7 {dimension_numbers = #tpu.dot_dimension_numbers<[1], [0], [0], [1], [0, 0, 1, 1], [], []>} : vector<64x32xf32>, vector<32x384xf32>, vector<64x384xf32> -> vector<64x384xf32>
    %7 = vector.extract_strided_slice %5 {offsets = [0, 0], sizes = [64, 128], strides = [1, 1]} : vector<64x384xf32> to vector<64x128xf32>
    %8 = vector.shape_cast %7 : vector<64x128xf32> to vector<1x64x128xf32>
    %9 = vector.extract_strided_slice %5 {offsets = [0, 256], sizes = [64, 128], strides = [1, 1]} : vector<64x384xf32> to vector<64x128xf32>
    %10 = vector.shape_cast %9 : vector<64x128xf32> to vector<1x64x128xf32>
    %11 = vector.extract_strided_slice %6 {offsets = [0, 128], sizes = [64, 128], strides = [1, 1]} : vector<64x384xf32> to vector<64x128xf32>
    %12 = vector.shape_cast %11 : vector<64x128xf32> to vector<1x64x128xf32>
    %13 = vector.extract_strided_slice %6 {offsets = [0, 256], sizes = [64, 128], strides = [1, 1]} : vector<64x384xf32> to vector<64x128xf32>
    "tpu.trace_start"() <{level = 10 : i32, message = "bqc,bkc->bqk"}> : () -> ()
    %cst_8 = arith.constant dense<0.000000e+00> : vector<1x64x64xf32>
    %14 = tpu.matmul %12, %8, %cst_8 {dimension_numbers = #tpu.dot_dimension_numbers<[2], [2], [1], [1], [0, 0, 0, 1, 1, 1], [0], [0]>} : vector<1x64x128xf32>, vector<1x64x128xf32>, vector<1x64x64xf32> -> vector<1x64x64xf32>
    "tpu.trace_stop"() : () -> ()
    %c0_9 = arith.constant 0 : index
    %c0_10 = arith.constant 0 : index
    %c0_11 = arith.constant 0 : index
    %15 = vector.load %arg3[%c0_9, %c0_10, %c0_11] : memref<1x1x64xf32, #tpu.memory_space<vmem>>, vector<1x1x64xf32>
    %16 = vector.broadcast %15 : vector<1x1x64xf32> to vector<1x64x64xf32>
    %17 = arith.addf %14, %16 : vector<1x64x64xf32>
    %cst_12 = arith.constant dense<0xFF800000> : vector<1x64xf32>
    %18 = vector.multi_reduction <maximumf>, %17, %cst_12 [2] : vector<1x64x64xf32> to vector<1x64xf32>
    %19 = vector.shape_cast %18 : vector<1x64xf32> to vector<1x64x1xf32>
    %20 = vector.broadcast %19 : vector<1x64x1xf32> to vector<1x64x64xf32>
    %21 = arith.subf %17, %20 : vector<1x64x64xf32>
    %22 = math.exp %21 : vector<1x64x64xf32>
    %cst_13 = arith.constant dense<0.000000e+00> : vector<1x64xf32>
    %23 = vector.multi_reduction <add>, %22, %cst_13 [2] : vector<1x64x64xf32> to vector<1x64xf32>
    %24 = vector.shape_cast %23 : vector<1x64xf32> to vector<1x64x1xf32>
    %25 = tpu.reciprocal %24 : vector<1x64x1xf32> -> vector<1x64x1xf32>
    %26 = vector.broadcast %25 : vector<1x64x1xf32> to vector<1x64x64xf32>
    %27 = arith.mulf %22, %26 : vector<1x64x64xf32>
    "tpu.trace_start"() <{level = 10 : i32, message = "bqk,bkc->bqc"}> : () -> ()
    %cst_14 = arith.constant dense<0.000000e+00> : vector<1x64x128xf32>
    %28 = tpu.matmul %27, %10, %cst_14 {dimension_numbers = #tpu.dot_dimension_numbers<[2], [1], [1], [2], [0, 0, 0, 1, 1, 2], [0], [0]>} : vector<1x64x64xf32>, vector<1x64x128xf32>, vector<1x64x128xf32> -> vector<1x64x128xf32>
    "tpu.trace_stop"() : () -> ()
    %29 = vector.shape_cast %28 : vector<1x64x128xf32> to vector<64x128xf32>
    %c0_15 = arith.constant 0 : index
    %c0_16 = arith.constant 0 : index
    %30 = vector.load %arg5[%c0_15, %c0_16] : memref<256x128xf32, #tpu.memory_space<vmem>>, vector<128x128xf32>
    %cst_17 = arith.constant dense<0.000000e+00> : vector<64x128xf32>
    %31 = tpu.matmul %29, %30, %cst_17 {dimension_numbers = #tpu.dot_dimension_numbers<[1], [0], [0], [1], [0, 0, 1, 1], [], []>} : vector<64x128xf32>, vector<128x128xf32>, vector<64x128xf32> -> vector<64x128xf32>
    %c128 = arith.constant 128 : index
    %c0_18 = arith.constant 0 : index
    %32 = vector.load %arg5[%c128, %c0_18] : memref<256x128xf32, #tpu.memory_space<vmem>>, vector<128x128xf32>
    %cst_19 = arith.constant dense<0.000000e+00> : vector<64x128xf32>
    %33 = tpu.matmul %13, %32, %cst_19 {dimension_numbers = #tpu.dot_dimension_numbers<[1], [0], [0], [1], [0, 0, 1, 1], [], []>} : vector<64x128xf32>, vector<128x128xf32>, vector<64x128xf32> -> vector<64x128xf32>
    %34 = arith.addf %31, %33 : vector<64x128xf32>
    %c0_20 = arith.constant 0 : index
    %c0_21 = arith.constant 0 : index
    %35 = vector.load %arg6[%c0_20, %c0_21] : memref<1x128xf32, #tpu.memory_space<vmem>>, vector<1x128xf32>
    %36 = vector.broadcast %35 : vector<1x128xf32> to vector<64x128xf32>
    %37 = arith.addf %34, %36 : vector<64x128xf32>
    %cst_22 = arith.constant 0.000000e+00 : f32
    %38 = vector.broadcast %cst_22 : f32 to vector<64x128xf32>
    %39 = arith.maximumf %37, %38 : vector<64x128xf32>
    %40 = vector.shape_cast %39 : vector<64x128xf32> to vector<1x64x128xf32>
    %c0_23 = arith.constant 0 : index
    %c0_24 = arith.constant 0 : index
    %c0_25 = arith.constant 0 : index
    %41 = vector.load %arg7[%c0_23, %c0_24, %c0_25] : memref<1x64x128xf32, #tpu.memory_space<vmem>>, vector<1x64x128xf32>
    tpu.vector_store %arg7[%c0_23, %c0_24, %c0_25], %40 {strides = array<i32>} : memref<1x64x128xf32, #tpu.memory_space<vmem>>, vector<1x64x128xf32>,
    %c0_26 = arith.constant 0 : index
    %c0_27 = arith.constant 0 : index
    %c0_28 = arith.constant 0 : index
    %42 = vector.load %arg8[%c0_26, %c0_27, %c0_28] : memref<1x64x64xf32, #tpu.memory_space<vmem>>, vector<1x64x64xf32>
    tpu.vector_store %arg8[%c0_26, %c0_27, %c0_28], %27 {strides = array<i32>} : memref<1x64x64xf32, #tpu.memory_space<vmem>>, vector<1x64x64xf32>,
    return
  }
  func.func @transform_0(%arg0: i32) -> (i32, i32, i32) {
    %c0_i32 = arith.constant 0 : i32
    %c0_i32_0 = arith.constant 0 : i32
    %c0_i32_1 = arith.constant 0 : i32
    return %arg0, %c0_i32, %c0_i32_0 : i32, i32, i32
  }
  func.func @transform_1(%arg0: i32) -> (i32, i32, i32) {
    %c0_i32 = arith.constant 0 : i32
    %c0_i32_0 = arith.constant 0 : i32
    %c0_i32_1 = arith.constant 0 : i32
    return %arg0, %c0_i32, %c0_i32_0 : i32, i32, i32
  }
  func.func @transform_2(%arg0: i32) -> (i32, i32, i32) {
    %c0_i32 = arith.constant 0 : i32
    %c0_i32_0 = arith.constant 0 : i32
    %c0_i32_1 = arith.constant 0 : i32
    return %arg0, %c0_i32, %c0_i32_0 : i32, i32, i32
  }
  func.func @transform_3(%arg0: i32) -> (i32, i32) {
    %c0_i32 = arith.constant 0 : i32
    %c0_i32_0 = arith.constant 0 : i32
    %c0_i32_1 = arith.constant 0 : i32
    return %c0_i32, %c0_i32_0 : i32, i32
  }
  func.func @transform_4(%arg0: i32) -> (i32, i32) {
    %c0_i32 = arith.constant 0 : i32
    %c0_i32_0 = arith.constant 0 : i32
    %c0_i32_1 = arith.constant 0 : i32
    return %c0_i32, %c0_i32_0 : i32, i32
  }
  func.func @transform_5(%arg0: i32) -> (i32, i32) {
    %c0_i32 = arith.constant 0 : i32
    %c0_i32_0 = arith.constant 0 : i32
    %c0_i32_1 = arith.constant 0 : i32
    return %c0_i32, %c0_i32_0 : i32, i32
  }
  func.func @transform_6(%arg0: i32) -> (i32, i32, i32) {
    %c0_i32 = arith.constant 0 : i32
    %c0_i32_0 = arith.constant 0 : i32
    %c0_i32_1 = arith.constant 0 : i32
    return %arg0, %c0_i32, %c0_i32_0 : i32, i32, i32
  }
  func.func @transform_7(%arg0: i32) -> (i32, i32, i32) {
    %c0_i32 = arith.constant 0 : i32
    %c0_i32_0 = arith.constant 0 : i32
    %c0_i32_1 = arith.constant 0 : i32
    return %arg0, %c0_i32, %c0_i32_0 : i32, i32, i32
  }
}

</mosaic_0001>

<bundles_post_ra>
// kernel: tpu_custom_call.1
= control target key start
LH: loop header
LB: loop body
LE: loop exit
PB: predicated region body
PF: predicated region fallthrough
CT: control target
= control target key end

     0   :  { %13 = vsyncpa [#allocation3], 0  ;;  %s2610_s0 = inlined_call_operand.vmem [shape: f32[2,64,32], index: 0, kind: input, shape index: {}]   ;;  %s2611_s1 = inlined_call_operand.vmem [shape: f32[2,64,32], index: 1, kind: input, shape index: {}]   ;;  %s2612_s2 = inlined_call_operand.vmem [shape: f32[2,1,64], index: 2, kind: input, shape index: {}]   ;;  %s2613_s3 = inlined_call_operand.vmem [shape: f32[32,384], index: 3, kind: input, shape index: {}]   ;;  %s2614_s4 = inlined_call_operand.vmem [shape: f32[256,128], index: 4, kind: input, shape index: {}]   ;;  %s2615_s5 = inlined_call_operand.vmem [shape: f32[1,128], index: 5, kind: input, shape index: {}]   ;;  %s2616_s6 = inlined_call_operand.hbm [shape: f32[2,64,128], index: 6, kind: output, shape index: {0}]   ;;  %s2617_s7 = inlined_call_operand.hbm [shape: f32[2,64,64], index: 7, kind: output, shape index: {1}]  }
   0x1   :  { %15 = vsyncpa [#allocation3 + $0x1], 0 }
   0x2   :  { %16 = vsyncpa [#allocation5], 0 }
   0x3   :  { %18 = vsyncpa [#allocation5 + $0x1], 0  ;;  %s2148_s24 = smov 0   ;;  %s2150_s25 = smov 0  }
   0x4   :  { %s2152_s26 = smov 0   ;;  %s2154_s27 = smov 0  }
   0x5 LB: > { %s2169_s28 = sadd.s32 4294967295, %s2101_s27   ;;  %s1580_s29 = sadd.s32 4294967294, %s2101_s27   ;;  %s2101_s27 = sphi %s2154_s27, %s2625_s27   ;;  %s2097_s26 = sphi %s2152_s26, %s2624_s26   ;;  %s2093_s25 = sphi %s2150_s25, %s2623_s25   ;;  %s2089_s24 = sphi %s2148_s24, %s2622_s24  }
   0x6   : > { %s2173_s30 = sadd.s32 1, %s2101_s27   ;;  %s172_s8 = sadd.s32 1, %s2097_s26 }
   0x7   : > { %s169_s9 = ssub.s32 %s2101_s27, %s2173_s30  ;;  %p182_p0 = scmp.ne.s32.totalorder %s2097_s26, %s2093_s25 }
   0x8   : > { %p170_p1 = scmp.eq.s32.totalorder %s169_s9, 0  ;;  %p183_p2 = scmp.eq.s32.totalorder %s2169_s28, 1 }
   0x9   : > { %p188_p3 = scmp.ne.s32.totalorder %s2093_s25, %s2089_s24  ;;  %p189_p4 = scmp.eq.s32.totalorder %s1580_s29, 1 }
   0xa   : > { %s2184_s10 = scalar_select %p170_p1, %s2097_s26, %s172_s8  }
   0xb   : > { %p2186_p5 = por %p183_p2, %p182_p0  ;;  %p2190_p6 = por %p189_p4, %p188_p3 }
   0xc   : > { %p1583_p7 = scmp.ge.s32.totalorder %s2101_s27, 1  ;;  %p264_p8 = scmp.lt.s32.totalorder %s2101_s27, 3 }
   0xe   : > { %p265_p9 = pnand %p1583_p7, %p264_p8 }
   0xf   : > { %p309_p10 = scmp.lt.s32.totalorder (!%p265_p9), %s2169_s28, 1  ;;  %s2416_s22 = sand.u32 (!%p265_p9), 1, %s2093_s25  }
  0x10   : > { %268 = sbr.rel (%p265_p9) target bundleno = 1219 (0x4c3), region = 44  ;;  %s1584_s23 = sshll.u32 (!%p265_p9), %s2416_s22, 6 }
  0x11   : > { %s2423_s29 = scalar_lea.vmem (!%p265_p9), [#allocation4], %s1584_s23  ;;  %s2618_s9 = sshll.u32 (!%p265_p9), %s2169_s28, 10 }
  0x12   : > { %s2513_s16 = scalar_lea.hbm (!%p265_p9), %s2617_s7, %s2618_s9  ;;  %s1436_s18 = scalar_lea.sflag (!%p265_p9), [#allocation5], %s2416_s22 }
  0x15   : > { %v348_v0 = vld [vmem:[%s2613_s3 + $0x50] sm:$0xff]  ;;  %v347_v1 = vld [vmem:[%s2613_s3 + $0x48] sm:$0xff]  ;;  %v345_v2 = vld [vmem:[%s2613_s3 + $0x38] sm:$0xff]  ;;  %v2103_v5 = vmov 0.0   ;;  %s2220_s13 = scalar_select %p309_p10, %s2169_s28, 1  ;;  %vm350_vm0 = vcmask 261120  }
  0x16   : > { %399 = vmatprep.subr.mxu0 %v348_v0  ;;  %v344_v3 = vld [vmem:[%s2613_s3 + $0x30] sm:$0xff]  ;;  %v349_v4 = vld [vmem:[%s2613_s3 + $0x58] sm:$0xff]  ;;  %439 = vmatprep.mubr.f32.mxu0 %v2103_v5  ;;  %v342_v6 = vld [vmem:[%s2613_s3 + $0x20] sm:$0xff]  ;;  %vm931_vm1 = vcmask 523264  }
  0x17   : > { %400 = vmatpush1.msra.mxu0 %v347_v1  ;;  %1748 = vmatprep.subr.mxu1 %v349_v4  ;;  %v346_v7 = vld [vmem:[%s2613_s3 + $0x40] sm:$0xff]  ;;  %v341_v8 = vld [vmem:[%s2613_s3 + $0x18] sm:$0xff]  ;;  %v343_v9 = vld [vmem:[%s2613_s3 + $0x28] sm:$0xff]  ;;  %s1640_s20 = sshll.u32 %s2220_s13, 6 }
  0x18   : > { %401 = vmatprep.subr.mxu0 %v345_v2  ;;  %1749 = vmatpush3.msra.mxu1 %v349_v4  ;;  %v339_v10 = vld [vmem:[%s2613_s3 + $0x8] sm:$0xff]  ;;  %v338_v11 = vld [vmem:[%s2613_s3] sm:$0xff]  ;;  %s2240_s8 = scalar_lea.vmem %s2610_s0, %s1640_s20  ;;  %v340_v12 = vld [vmem:[%s2613_s3 + $0x10] sm:$0xff]  ;;  %s2271_s17 = scalar_lea.vmem %s2611_s1, %s1640_s20 }
  0x19   : > { %402 = vmatpush1.msra.mxu0 %v344_v3  ;;  %1750 = vmatprep.subr.mxu1 %v346_v7  ;;  %v322_v13 = vld [vmem:[%s2240_s8] sm:$0xff]  ;;  %v323_v14 = vld [vmem:[%s2240_s8 + $0x8] sm:$0xff]  ;;  %v324_v15 = vld [vmem:[%s2240_s8 + $0x10] sm:$0xff]  ;;  %s321_s20 = scalar_lea.vmem %s2612_s2, %s2220_s13 }
  0x1a   : > { %403 = vmatprep.subr.mxu0 %v342_v6  ;;  %1751 = vmatpush3.msra.mxu1 %v346_v7  ;;  %v325_v16 = vld [vmem:[%s2240_s8 + $0x18] sm:$0xff]  ;;  %v326_v17 = vld [vmem:[%s2240_s8 + $0x20] sm:$0xff]  ;;  %v327_v18 = vld [vmem:[%s2240_s8 + $0x28] sm:$0xff] }
  0x1b   : > { %404 = vmatpush1.msra.mxu0 %v341_v8  ;;  %1752 = vmatprep.subr.mxu1 %v343_v9  ;;  %v328_v19 = vld [vmem:[%s2240_s8 + $0x30] sm:$0xff]  ;;  %v329_v20 = vld [vmem:[%s2240_s8 + $0x38] sm:$0xff]  ;;  %v330_v21 = vld [vmem:[%s2271_s17] sm:$0xff] }
  0x1c   : > { %405 = vmatprep.subr.mxu0 %v339_v10  ;;  %1753 = vmatpush3.msra.mxu1 %v343_v9  ;;  %v331_v22 = vld [vmem:[%s2271_s17 + $0x8] sm:$0xff]  ;;  %v332_v23 = vld [vmem:[%s2271_s17 + $0x10] sm:$0xff]  ;;  %v333_v24 = vld [vmem:[%s2271_s17 + $0x18] sm:$0xff] }
  0x1d   : > { %406 = vmatpush1.msra.mxu0 %v338_v11  ;;  %1754 = vmatprep.subr.mxu1 %v340_v12  ;;  %v334_v25 = vld [vmem:[%s2271_s17 + $0x20] sm:$0xff]  ;;  %v335_v26 = vld [vmem:[%s2271_s17 + $0x28] sm:$0xff]  ;;  %v336_v27 = vld [vmem:[%s2271_s17 + $0x30] sm:$0xff] }
  0x1e   : > { %1590 = vmatmul.mubr.msk.f32.vlgmr.msra.gmra.mxu0 %vm350_vm0, %v322_v13  ;;  %1755 = vmatpush3.msra.mxu1 %v340_v12  ;;  %v337_v28 = vld [vmem:[%s2271_s17 + $0x38] sm:$0xff]  ;;  %s1465_s17 = sshll.u32 %s2423_s29, 4  ;;  %s2516_s17 = int_to_ptr.vmem [resolvable:$true] %s1465_s17 }
  0x1f   : > { %1756 = vmatprep.mubr.msk.f32.mxu1 %vm350_vm0, %v322_v13  ;;  %444 = vmatprep.mubr.f32.mxu0 %v2103_v5  ;;  %s2011_s19 = scalar_lea.vmem %s2516_s17, 1024 }
  0x20   : > { %1757 = vmatmul.mubr.msk.f32.vlgmr.msra.gmra.mxu1 %vm350_vm0, %v323_v14  ;;  %633 = vmatprep.subr.mxu1 %v348_v0  ;;  %p2012_p11 = scmp.ne.s32.totalorder %s2516_s17, %s2011_s19 }
  0x21   : > { %1759 = vmatprep.mubr.msk.f32.mxu1 %vm350_vm0, %v324_v15  ;;  %634 = vmatpush1.msra.mxu1 %v347_v1 }
  0x22   : > { %1591 = vmatmul.mubr.msk.f32.gmra.mxu0 %vm350_vm0, %v323_v14  ;;  %635 = vmatprep.subr.mxu1 %v345_v2  ;;  %p2013_p12 = pnand %p2012_p11, %p2186_p5 }
  0x23   : > { %449 = vmatprep.mubr.f32.mxu0 %v2103_v5  ;;  %636 = vmatpush1.msra.mxu1 %v344_v3 }
  0x24   : > { %1760 = vmatmul.mubr.msk.f32.gmra.mxu1 %vm350_vm0, %v325_v16  ;;  %637 = vmatprep.subr.mxu1 %v342_v6  ;;  %v1622_v6 = vld [vmem:[%s321_s20] ss:$0 sm:$0xff]  ;;  %p2014_p13 = pneg %p2013_p12  ;;  %s2104_s20 = smov [#allocation4]  }
  0x25   : > { %1762 = vmatprep.mubr.msk.f32.mxu1 %vm350_vm0, %v326_v17  ;;  %638 = vmatpush1.msra.mxu1 %v341_v8  ;;  %s2015_s13 = sshll.u32 %s2104_s20, 4  ;;  %s2016_s13 = int_to_ptr.vmem [resolvable:$false] %s2015_s13 }
  0x26   : > { %1592 = vmatmul.mubr.msk.f32.gmra.mxu0 %vm350_vm0, %v324_v15  ;;  %639 = vmatprep.subr.mxu1 %v339_v10  ;;  %s2017_s21 = scalar_lea.vmem %s2016_s13, 2048  ;;  %p2018_p0 = scmp.lt.s32.totalorder %s2516_s17, %s2016_s13 }
  0x27   : > { %454 = vmatprep.mubr.f32.mxu0 %v2103_v5  ;;  %640 = vmatpush1.msra.mxu1 %v338_v11  ;;  %p2019_p1 = scmp.lt.s32.totalorder %s2017_s21, %s2011_s19 }
  0x28   : > { %1763 = vmatmul.mubr.msk.f32.gmra.mxu1 %vm350_vm0, %v327_v18  ;;  %1768 = vmatprep.subr.mxu0 %v349_v4 }
  0x29   : > { %1765 = vmatprep.mubr.msk.f32.mxu1 %vm350_vm0, %v328_v19  ;;  %1769 = vmatpush3.msra.mxu0 %v349_v4  ;;  %p2020_p2 = por %p2019_p1, %p2018_p0 }
  0x2a   : > { %1593 = vmatmul.mubr.msk.f32.gmra.mxu0 %vm350_vm0, %v325_v16  ;;  %1770 = vmatprep.subr.mxu0 %v346_v7 }
  0x2b   : > { %459 = vmatprep.mubr.f32.mxu0 %v2103_v5  ;;  %1771 = vmatpush3.msra.mxu0 %v346_v7  ;;  %p2021_p3 = pnand %p2020_p2, %p2014_p13 }
  0x2c   : > { %1766 = vmatmul.mubr.msk.f32.gmra.mxu1 %vm350_vm0, %v329_v20  ;;  %1772 = vmatprep.subr.mxu0 %v343_v9 }
  0x2d   : > { %673 = vmatprep.mubr.f32.mxu1 %v2103_v5  ;;  %1773 = vmatpush3.msra.mxu0 %v343_v9 }
  0x2e   : > { %1594 = vmatmul.mubr.msk.f32.gmra.mxu0 %vm350_vm0, %v326_v17  ;;  %1774 = vmatprep.subr.mxu0 %v340_v12 }
  0x2f   : > { %464 = vmatprep.mubr.f32.mxu0 %v2103_v5  ;;  %1775 = vmatpush3.msra.mxu0 %v340_v12 }
  0x30   : > { %1606 = vmatmul.mubr.msk.f32.vlgmr.msra.gmra.mxu1 %vm350_vm0, %v330_v21 }
  0x31   : > { %678 = vmatprep.mubr.f32.mxu1 %v2103_v5 }
  0x32   : > { %1595 = vmatmul.mubr.msk.f32.gmra.mxu0 %vm350_vm0, %v327_v18 }
  0x33   : > { %469 = vmatprep.mubr.f32.mxu0 %v2103_v5 }
  0x34   : > { %1607 = vmatmul.mubr.msk.f32.gmra.mxu1 %vm350_vm0, %v331_v22 }
  0x35   : > { %683 = vmatprep.mubr.f32.mxu1 %v2103_v5 }
  0x36   : > { %1596 = vmatmul.mubr.msk.f32.gmra.mxu0 %vm350_vm0, %v328_v19 }
  0x37   : > { %474 = vmatprep.mubr.f32.mxu0 %v2103_v5 }
  0x38   : > { %1608 = vmatmul.mubr.msk.f32.gmra.mxu1 %vm350_vm0, %v332_v23 }
  0x39   : > { %688 = vmatprep.mubr.f32.mxu1 %v2103_v5 }
  0x3a   : > { %1597 = vmatmul.mubr.msk.f32.gmra.mxu0 %vm350_vm0, %v329_v20 }
  0x3b   : > { %1776 = vmatprep.mubr.msk.f32.mxu0 %vm350_vm0, %v330_v21 }
  0x3c   : > { %1609 = vmatmul.mubr.msk.f32.gmra.mxu1 %vm350_vm0, %v333_v24 }
  0x3d   : > { %693 = vmatprep.mubr.f32.mxu1 %v2103_v5 }
  0x3e   : > { %1777 = vmatmul.mubr.msk.f32.vlgmr.msra.gmra.mxu0 %vm350_vm0, %v331_v22 }
  0x3f   : > { %1779 = vmatprep.mubr.msk.f32.mxu0 %vm350_vm0, %v332_v23 }
  0x40   : > { %1610 = vmatmul.mubr.msk.f32.gmra.mxu1 %vm350_vm0, %v334_v25 }
  0x41   : > { %698 = vmatprep.mubr.f32.mxu1 %v2103_v5 }
  0x42   : > { %1780 = vmatmul.mubr.msk.f32.gmra.mxu0 %vm350_vm0, %v333_v24 }
  0x43   : > { %1782 = vmatprep.mubr.msk.f32.mxu0 %vm350_vm0, %v334_v25 }
  0x44   : > { %1611 = vmatmul.mubr.msk.f32.gmra.mxu1 %vm350_vm0, %v335_v26 }
  0x45   : > { %703 = vmatprep.mubr.f32.mxu1 %v2103_v5 }
  0x46   : > { %1783 = vmatmul.mubr.msk.f32.gmra.mxu0 %vm350_vm0, %v335_v26 }
  0x47   : > { %1785 = vmatprep.mubr.msk.f32.mxu0 %vm350_vm0, %v336_v27 }
  0x48   : > { %1612 = vmatmul.mubr.msk.f32.gmra.mxu1 %vm350_vm0, %v336_v27 }
  0x49   : > { %708 = vmatprep.mubr.f32.mxu1 %v2103_v5 }
  0x4a   : > { %1786 = vmatmul.mubr.msk.f32.gmra.mxu0 %vm350_vm0, %v337_v28 }
  0x4c   : > { %1613 = vmatmul.mubr.msk.f32.gmra.mxu1 %vm350_vm0, %v337_v28 }
  0xde   : > { %v2315_v29 = vpop.f32.mrf.mxu0 }
  0xe0   : > { %v443_v30 = vpop.f32.mrf.mxu0  ;;  %v1758_v31 = vpop.f32.mrf.mxu1 }
  0xe2   : > { %v2317_v32 = vpop.f32.mrf.mxu0  ;;  %v546_v33 = vpop.f32.mrf.mxu1 }
  0xe4   : > { %v448_v34 = vpop.f32.mrf.mxu0  ;;  %v1761_v35 = vpop.f32.mrf.mxu1 }
  0xe6   : > { %v451_v36 = vpop.f32.mrf.mxu0  ;;  %v556_v37 = vpop.f32.mrf.mxu1 }
  0xe8   : > { %v453_v38 = vpop.f32.mrf.mxu0  ;;  %v1764_v39 = vpop.f32.mrf.mxu1 }
  0xea   : > { %v456_v40 = vpop.f32.mrf.mxu0  ;;  %v566_v41 = vpop.f32.mrf.mxu1 }
  0xec   : > { %v458_v42 = vpop.f32.mrf.mxu0  ;;  %v1767_v43 = vpop.f32.mrf.mxu1 }
  0xed   : > { %1816 = vmatprep.subr.mxu0 %v1767_v43 }
  0xee   : > { %v461_v44 = vpop.f32.mrf.mxu0  ;;  %v576_v45 = vpop.f32.mrf.mxu1  ;;  %1817 = vmatpush3.msra.mxu0 %v1767_v43 }
  0xef   : > { %1818 = vmatprep.subr.mxu0 %v576_v45 }
  0xf0   : > { %v463_v46 = vpop.f32.mrf.mxu0  ;;  %1819 = vmatpush3.msra.mxu0 %v576_v45  ;;  %v675_v47 = vpop.f32.mrf.mxu1 }
  0xf1   : > { %1820 = vmatprep.subr.mxu0 %v1764_v39 }
  0xf2   : > { %v466_v48 = vpop.f32.mrf.mxu0  ;;  %1821 = vmatpush3.msra.mxu0 %v1764_v39  ;;  %v676_v49 = vpop.f32.mrf.mxu1 }
  0xf3   : > { %1822 = vmatprep.subr.mxu0 %v566_v41  ;;  %1804 = vmatprep.mubr.f32.mxu1 %v676_v49 }
  0xf4   : > { %v468_v50 = vpop.f32.mrf.mxu0  ;;  %1823 = vmatpush3.msra.mxu0 %v566_v41  ;;  %v680_v51 = vpop.f32.mrf.mxu1 }
  0xf5   : > { %1824 = vmatprep.subr.mxu0 %v1761_v35 }
  0xf6   : > { %v471_v52 = vpop.f32.mrf.mxu0  ;;  %1825 = vmatpush3.msra.mxu0 %v1761_v35  ;;  %v681_v53 = vpop.f32.mrf.mxu1 }
  0xf7   : > { %1826 = vmatprep.subr.mxu0 %v556_v37 }
  0xf8   : > { %v473_v54 = vpop.f32.mrf.mxu0  ;;  %1827 = vmatpush3.msra.mxu0 %v556_v37  ;;  %v685_v55 = vpop.f32.mrf.mxu1 }
  0xf9   : > { %1828 = vmatprep.subr.mxu0 %v1758_v31 }
  0xfa   : > { %v476_v56 = vpop.f32.mrf.mxu0  ;;  %1829 = vmatpush3.msra.mxu0 %v1758_v31  ;;  %v686_v57 = vpop.f32.mrf.mxu1 }
  0xfb   : > { %1788 = vmatprep.subr.mxu1 %v476_v56  ;;  %1830 = vmatprep.subr.mxu0 %v546_v33 }
  0xfc   : > { %v478_v58 = vpop.f32.mrf.mxu0  ;;  %1789 = vmatpush3.xpose.msra.mxu1 %v476_v56  ;;  %1831 = vmatpush3.msra.mxu0 %v546_v33  ;;  %v690_v59 = vpop.f32.mrf.mxu1 }
  0xfd   : > { %1790 = vmatprep.subr.mxu1 %v471_v52 }
  0xfe   : > { %v691_v60 = vpop.f32.mrf.mxu1 }
 0x100   : > { %1791 = vmatpush3.xpose.msra.mxu1 %v471_v52  ;;  %v695_v61 = vpop.f32.mrf.mxu1 }
 0x101   : > { %1792 = vmatprep.subr.mxu1 %v466_v48 }
 0x102   : > { %v696_v62 = vpop.f32.mrf.mxu1 }
 0x104   : > { %1793 = vmatpush3.xpose.msra.mxu1 %v466_v48  ;;  %v700_v63 = vpop.f32.mrf.mxu1 }
 0x105   : > { %1794 = vmatprep.subr.mxu1 %v461_v44 }
 0x106   : > { %v701_v0 = vpop.f32.mrf.mxu1 }
 0x108   : > { %1795 = vmatpush3.xpose.msra.mxu1 %v461_v44  ;;  %v705_v1 = vpop.f32.mrf.mxu1 }
 0x109   : > { %1796 = vmatprep.subr.mxu1 %v456_v40 }
 0x10a   : > { %v706_v2 = vpop.f32.mrf.mxu1 }
 0x10c   : > { %1797 = vmatpush3.xpose.msra.mxu1 %v456_v40  ;;  %v710_v3 = vpop.f32.mrf.mxu1 }
 0x10d   : > { %1798 = vmatprep.subr.mxu1 %v451_v36 }
 0x10e   : > { %v711_v4 = vpop.f32.mrf.mxu1 }
 0x110   : > { %1799 = vmatpush3.xpose.msra.mxu1 %v451_v36 }
 0x111   : > { %1800 = vmatprep.subr.mxu1 %v2317_v32 }
 0x114   : > { %1801 = vmatpush3.xpose.msra.mxu1 %v2317_v32 }
 0x115   : > { %1802 = vmatprep.subr.mxu1 %v2315_v29 }
 0x118   : > { %1803 = vmatpush3.xpose.msra.mxu1 %v2315_v29 }
 0x11b   : > { %1805 = vmatmul.mubr.f32.vlgmr.msra.gmra.mxu1 %v681_v53 }
 0x11c   : > { %1807 = vmatprep.mubr.f32.mxu1 %v686_v57 }
 0x11f   : > { %1808 = vmatmul.mubr.f32.gmra.mxu1 %v691_v60 }
 0x120   : > { %1810 = vmatprep.mubr.f32.mxu1 %v696_v62 }
 0x123   : > { %1811 = vmatmul.mubr.f32.gmra.mxu1 %v701_v0 }
 0x124   : > { %1813 = vmatprep.mubr.f32.mxu1 %v706_v2 }
 0x127   : > { %1814 = vmatmul.mubr.f32.gmra.mxu1 %v711_v4 }
 0x1db   : > { %v1806_v5 = vpop.f32.mrf.mxu1 }
 0x1dc   : > { %v898_v10 = vadd.f32 %v1806_v5, %v1622_v6 }
 0x1dd   : > { %v892_v7 = vpop.f32.mrf.mxu1 }
 0x1de   : > { %v893_v8 = vadd.f32 %v1622_v6, %v892_v7  ;;  %v935_v17 = vsel %vm931_vm1, %v898_v10, -inf  ;;  %v1164_v7 = vld [vmem:[%s2614_s4 + $0x78] sm:$0xff] }
 0x1df   : > { %v1809_v9 = vpop.f32.mrf.mxu1  ;;  %1888 = vmatprep.subr.mxu1 %v1164_v7 }
 0x1e0   : > { %v932_v11 = vsel %vm931_vm1, %v893_v8, -inf  ;;  %v908_v15 = vadd.f32 %v1809_v9, %v1622_v6  ;;  %1889 = vmatpush3.msra.mxu1 %v1164_v7  ;;  %v1162_v9 = vld [vmem:[%s2614_s4 + $0x68] sm:$0xff] }
 0x1e1   : > { %v902_v12 = vpop.f32.mrf.mxu1  ;;  %933 = vmax.xlane.f32.xlu0 %v932_v11  ;;  %v1160_v11 = vld [vmem:[%s2614_s4 + $0x58] sm:$0xff] }
 0x1e2   : > { %v903_v13 = vadd.f32 %v1622_v6, %v902_v12  ;;  %v941_v22 = vsel %vm931_vm1, %v908_v15, -inf  ;;  %v1159_v12 = vld [vmem:[%s2614_s4 + $0x50] sm:$0xff] }
 0x1e3   : > { %v1812_v14 = vpop.f32.mrf.mxu1 }
 0x1e4   : > { %v938_v16 = vsel %vm931_vm1, %v903_v13, -inf  ;;  %v918_v21 = vadd.f32 %v1812_v14, %v1622_v6  ;;  %v1157_v14 = vld [vmem:[%s2614_s4 + $0x40] sm:$0xff] }
 0x1e5   : > { %v912_v18 = vpop.f32.mrf.mxu1  ;;  %939 = vmax.xlane.f32.xlu1 %v938_v16  ;;  %936 = vmax.xlane.f32.xlu0 %v935_v17  ;;  %v1155_v16 = vld [vmem:[%s2614_s4 + $0x30] sm:$0xff]  ;;  %v1154_v17 = vld [vmem:[%s2614_s4 + $0x28] sm:$0xff] }
 0x1e6   : > { %v913_v19 = vadd.f32 %v1622_v6, %v912_v18  ;;  %v947_v27 = vsel %vm931_vm1, %v918_v21, -inf  ;;  %v1153_v18 = vld [vmem:[%s2614_s4 + $0x20] sm:$0xff] }
 0x1e7   : > { %v1815_v20 = vpop.f32.mrf.mxu1 }
 0x1e8   : > { %v944_v23 = vsel %vm931_vm1, %v913_v19, -inf  ;;  %v928_v26 = vadd.f32 %v1815_v20, %v1622_v6  ;;  %v1151_v20 = vld [vmem:[%s2614_s4 + $0x10] sm:$0xff] }
 0x1e9   : > { %v922_v24 = vpop.f32.mrf.mxu1  ;;  %942 = vmax.xlane.f32.xlu1 %v941_v22  ;;  %945 = vmax.xlane.f32.xlu0 %v944_v23 }
 0x1ea   : > { %v923_v25 = vadd.f32 %v1622_v6, %v922_v24  ;;  %v953_v29 = vsel %vm931_vm1, %v928_v26, -inf  ;;  %v2370_v6 = vld [vmem:[%s2614_s4 + $0xf8] sm:$0xff] }
 0x1eb   : > { %1844 = vmatprep.subr.mxu0 %v2370_v6 }
 0x1ec   : > { %v950_v28 = vsel %vm931_vm1, %v923_v25, -inf }
 0x1ed   : > { %948 = vmax.xlane.f32.xlu1 %v947_v27  ;;  %951 = vmax.xlane.f32.xlu0 %v950_v28 }
 0x1f1   : > { %954 = vmax.xlane.f32.xlu1 %v953_v29 }
 0x26a   : > { %v934_v30 = vpop.xlane.xlu0 %933 }
 0x26b   : > { %v956_v31 = vsub.f32 %v893_v8, %v934_v30  ;;  %v1163_v8 = vld [vmem:[%s2614_s4 + $0x70] sm:$0xff] }
 0x26c   : > { %1890 = vmatprep.subr.mxu1 %v1163_v8 }
 0x26d   : > { %v964_v32 = vmul.f32 1.442695, %v956_v31  ;;  %1891 = vmatpush3.msra.mxu1 %v1163_v8 }
 0x26e   : > { %v940_v33 = vpop.xlane.xlu1 %939  ;;  %v937_v34 = vpop.xlane.xlu0 %936  ;;  %1892 = vmatprep.subr.mxu1 %v1162_v9 }
 0x26f   : > { %1979 = vpow2.f32 %v964_v32  ;;  %v958_v35 = vsub.f32 %v903_v13, %v940_v33  ;;  %v957_v36 = vsub.f32 %v898_v10, %v937_v34  ;;  %1893 = vmatpush3.msra.mxu1 %v1162_v9  ;;  %v1161_v10 = vld [vmem:[%s2614_s4 + $0x60] sm:$0xff]  ;;  %v1158_v13 = vld [vmem:[%s2614_s4 + $0x48] sm:$0xff] }
 0x270   : > { %1894 = vmatprep.subr.mxu1 %v1161_v10 }
 0x271   : > { %v968_v37 = vmul.f32 1.442695, %v958_v35  ;;  %v966_v38 = vmul.f32 1.442695, %v957_v36  ;;  %1895 = vmatpush3.msra.mxu1 %v1161_v10  ;;  %v1179_v35 = vld [vmem:[%s2614_s4 + $0xf0] sm:$0xff] }
 0x272   : > { %v943_v39 = vpop.xlane.xlu1 %942  ;;  %v946_v40 = vpop.xlane.xlu0 %945  ;;  %1896 = vmatprep.subr.mxu1 %v1160_v11 }
 0x273   : > { %1981 = vpow2.f32 %v968_v37  ;;  %v959_v41 = vsub.f32 %v908_v15, %v943_v39  ;;  %v960_v42 = vsub.f32 %v913_v19, %v946_v40  ;;  %1897 = vmatpush3.msra.mxu1 %v1160_v11  ;;  %v1156_v15 = vld [vmem:[%s2614_s4 + $0x38] sm:$0xff]  ;;  %v1178_v37 = vld [vmem:[%s2614_s4 + $0xe8] sm:$0xff] }
 0x274   : > { %1983 = vpow2.f32 %v966_v38  ;;  %1898 = vmatprep.subr.mxu1 %v1159_v12  ;;  %v1152_v19 = vld [vmem:[%s2614_s4 + $0x18] sm:$0xff] }
 0x275   : > { %v970_v43 = vmul.f32 1.442695, %v959_v41  ;;  %v972_v44 = vmul.f32 1.442695, %v960_v42  ;;  %1899 = vmatpush3.msra.mxu1 %v1159_v12  ;;  %v1177_v41 = vld [vmem:[%s2614_s4 + $0xe0] sm:$0xff] }
 0x276   : > { %v949_v45 = vpop.xlane.xlu1 %948  ;;  %v952_v46 = vpop.xlane.xlu0 %951  ;;  %1900 = vmatprep.subr.mxu1 %v1158_v13 }
 0x277   : > { %1985 = vpow2.f32 %v970_v43  ;;  %v961_v47 = vsub.f32 %v918_v21, %v949_v45  ;;  %v962_v48 = vsub.f32 %v923_v25, %v952_v46  ;;  %1901 = vmatpush3.msra.mxu1 %v1158_v13  ;;  %v1176_v43 = vld [vmem:[%s2614_s4 + $0xd8] sm:$0xff]  ;;  %v1778_v46 = vpop.f32.mrf.mxu0 }
 0x278   : > { %1987 = vpow2.f32 %v972_v44  ;;  %1902 = vmatprep.subr.mxu1 %v1157_v14 }
 0x279   : > { %v974_v49 = vmul.f32 1.442695, %v961_v47  ;;  %v976_v50 = vmul.f32 1.442695, %v962_v48  ;;  %1903 = vmatpush3.msra.mxu1 %v1157_v14  ;;  %v1175_v48 = vld [vmem:[%s2614_s4 + $0xd0] sm:$0xff] }
 0x27a   : > { %v955_v51 = vpop.xlane.xlu1 %954  ;;  %1904 = vmatprep.subr.mxu1 %v1156_v15 }
 0x27b   : > { %1989 = vpow2.f32 %v974_v49  ;;  %v963_v52 = vsub.f32 %v928_v26, %v955_v51  ;;  %1905 = vmatpush3.msra.mxu1 %v1156_v15 }
 0x27c   : > { %v2335_v53 = vpop.eup %1979  ;;  %1991 = vpow2.f32 %v976_v50  ;;  %1906 = vmatprep.subr.mxu1 %v1155_v16  ;;  %v1174_v50 = vld [vmem:[%s2614_s4 + $0xc8] sm:$0xff] }
 0x27d   : > { %v978_v54 = vmul.f32 1.442695, %v963_v52  ;;  %v980_v55 = vsel %vm931_vm1, %v2335_v53, 0.0  ;;  %1907 = vmatpush3.msra.mxu1 %v1155_v16  ;;  %v780_v52 = vpop.f32.mrf.mxu0 }
 0x27e   : > { %981 = vadd.xlane.f32.xlu0 %v980_v55  ;;  %1908 = vmatprep.subr.mxu1 %v1154_v17  ;;  %v1171_v55 = vld [vmem:[%s2614_s4 + $0xb0] sm:$0xff] }
 0x27f   : > { %1993 = vpow2.f32 %v978_v54  ;;  %1909 = vmatpush3.msra.mxu1 %v1154_v17  ;;  %v1172_v54 = vld [vmem:[%s2614_s4 + $0xb8] sm:$0xff] }
 0x280   : > { %v2339_v56 = vpop.eup %1981  ;;  %1910 = vmatprep.subr.mxu1 %v1153_v18 }
 0x281   : > { %v2341_v57 = vpop.eup %1983  ;;  %v986_v58 = vsel %vm931_vm1, %v2339_v56, 0.0  ;;  %1911 = vmatpush3.msra.mxu1 %v1153_v18 }
 0x282   : > { %987 = vadd.xlane.f32.xlu0 %v986_v58  ;;  %v983_v59 = vsel %vm931_vm1, %v2341_v57, 0.0  ;;  %1912 = vmatprep.subr.mxu1 %v1152_v19  ;;  %v1169_v58 = vld [vmem:[%s2614_s4 + $0xa0] sm:$0xff] }
 0x283   : > { %984 = vadd.xlane.f32.xlu1 %v983_v59  ;;  %1913 = vmatpush3.msra.mxu1 %v1152_v19  ;;  %v1168_v59 = vld [vmem:[%s2614_s4 + $0x98] sm:$0xff] }
 0x284   : > { %v2347_v60 = vpop.eup %1985  ;;  %1914 = vmatprep.subr.mxu1 %v1151_v20 }
 0x285   : > { %v2349_v61 = vpop.eup %1987  ;;  %v989_v62 = vsel %vm931_vm1, %v2347_v60, 0.0  ;;  %1915 = vmatpush3.msra.mxu1 %v1151_v20 }
 0x286   : > { %v992_v63 = vsel %vm931_vm1, %v2349_v61, 0.0 }
 0x287   : > { %990 = vadd.xlane.f32.xlu1 %v989_v62  ;;  %993 = vadd.xlane.f32.xlu0 %v992_v63  ;;  %v1166_v62 = vld [vmem:[%s2614_s4 + $0x88] sm:$0xff] }
 0x288   : > { %v2355_v0 = vpop.eup %1989 }
 0x289   : > { %v2357_v1 = vpop.eup %1991  ;;  %v995_v2 = vsel %vm931_vm1, %v2355_v0, 0.0 }
 0x28a   : > { %v998_v3 = vsel %vm931_vm1, %v2357_v1, 0.0 }
 0x28b   : > { %996 = vadd.xlane.f32.xlu1 %v995_v2  ;;  %999 = vadd.xlane.f32.xlu0 %v998_v3 }
 0x28c   : > { %v2363_v4 = vpop.eup %1993 }
 0x28d   : > { %v1001_v5 = vsel %vm931_vm1, %v2363_v4, 0.0 }
 0x28f   : > { %1002 = vadd.xlane.f32.xlu1 %v1001_v5  ;;  %v1149_v5 = vld [vmem:[%s2614_s4] sm:$0xff] }
 0x307   : > { %v982_v21 = vpop.xlane.xlu0 %981 }
 0x308   : > { %1995 = vrcp.f32 %v982_v21 }
 0x30b   : > { %v988_v22 = vpop.xlane.xlu0 %987 }
 0x30c   : > { %v985_v23 = vpop.xlane.xlu1 %984  ;;  %1997 = vrcp.f32 %v988_v22 }
 0x30d   : > { %1999 = vrcp.f32 %v985_v23 }
 0x310   : > { %v991_v24 = vpop.xlane.xlu1 %990  ;;  %v994_v25 = vpop.xlane.xlu0 %993 }
 0x311   : > { %2001 = vrcp.f32 %v991_v24 }
 0x312   : > { %2003 = vrcp.f32 %v994_v25 }
 0x314   : > { %v997_v26 = vpop.xlane.xlu1 %996  ;;  %v1000_v27 = vpop.xlane.xlu0 %999 }
 0x315   : > { %v1996_v28 = vpop.eup %1995  ;;  %2005 = vrcp.f32 %v997_v26 }
 0x316   : > { %2007 = vrcp.f32 %v1000_v27  ;;  %v1012_v29 = vmul.f32 %v1996_v28, %v2335_v53  ;;  %v1173_v53 = vld [vmem:[%s2614_s4 + $0xc0] sm:$0xff] }
 0x318   : > { %v1003_v30 = vpop.xlane.xlu1 %1002  ;;  %1832 = vmatprep.mubr.msk.f32.mxu0 %vm931_vm1, %v1012_v29  ;;  %1422 = vst.msk [vmem:[%s2423_s29] sm:$0xff] %vm931_vm1, %v1012_v29 }
 0x319   : > { %v1998_v31 = vpop.eup %1997  ;;  %2009 = vrcp.f32 %v1003_v30 }
 0x31a   : > { %v2000_v32 = vpop.eup %1999  ;;  %v1014_v33 = vmul.f32 %v1998_v31, %v2339_v56  ;;  %v1170_v56 = vld [vmem:[%s2614_s4 + $0xa8] sm:$0xff] }
 0x31b   : > { %v1013_v34 = vmul.f32 %v2000_v32, %v2341_v57  ;;  %v1781_v57 = vpop.f32.mrf.mxu0 }
 0x31c   : > { %1424 = vst.msk [vmem:[%s2423_s29 + $0x10] sm:$0xff] %vm931_vm1, %v1014_v33 }
 0x31d   : > { %1423 = vst.msk [vmem:[%s2423_s29 + $0x8] sm:$0xff] %vm931_vm1, %v1013_v34  ;;  %1833 = vmatmul.mubr.msk.f32.vlgmr.msra.gmra.mxu0 %vm931_vm1, %v1013_v34 }
 0x31e   : > { %v2002_v36 = vpop.eup %2001  ;;  %1835 = vmatprep.mubr.msk.f32.mxu0 %vm931_vm1, %v1014_v33  ;;  %1845 = vmatpush3.msra.mxu0 %v2370_v6 }
 0x31f   : > { %v2004_v38 = vpop.eup %2003  ;;  %v1015_v39 = vmul.f32 %v2002_v36, %v2347_v60  ;;  %1846 = vmatprep.subr.mxu0 %v1179_v35  ;;  %v790_v60 = vpop.f32.mrf.mxu0 }
 0x320   : > { %v1016_v40 = vmul.f32 %v2004_v38, %v2349_v61  ;;  %1847 = vmatpush3.msra.mxu0 %v1179_v35  ;;  %v1167_v61 = vld [vmem:[%s2614_s4 + $0x90] sm:$0xff] }
 0x321   : > { %1836 = vmatmul.mubr.msk.f32.gmra.mxu0 %vm931_vm1, %v1015_v39  ;;  %1425 = vst.msk [vmem:[%s2423_s29 + $0x18] sm:$0xff] %vm931_vm1, %v1015_v39  ;;  %1848 = vmatprep.subr.mxu0 %v1178_v37  ;;  %v1784_v63 = vpop.f32.mrf.mxu0 }
 0x322   : > { %v2006_v42 = vpop.eup %2005  ;;  %1838 = vmatprep.mubr.msk.f32.mxu0 %vm931_vm1, %v1016_v40  ;;  %1426 = vst.msk [vmem:[%s2423_s29 + $0x20] sm:$0xff] %vm931_vm1, %v1016_v40  ;;  %1849 = vmatpush3.msra.mxu0 %v1178_v37 }
 0x323   : > { %v2008_v44 = vpop.eup %2007  ;;  %v1017_v45 = vmul.f32 %v2006_v42, %v2355_v0  ;;  %1850 = vmatprep.subr.mxu0 %v1177_v41  ;;  %v1165_v0 = vld [vmem:[%s2614_s4 + $0x80] sm:$0xff] }
 0x324   : > { %v1018_v47 = vmul.f32 %v2008_v44, %v2357_v1  ;;  %1851 = vmatpush3.msra.mxu0 %v1177_v41  ;;  %v800_v1 = vpop.f32.mrf.mxu0 }
 0x325   : > { %1839 = vmatmul.mubr.msk.f32.gmra.mxu0 %vm931_vm1, %v1017_v45  ;;  %1427 = vst.msk [vmem:[%s2423_s29 + $0x28] sm:$0xff] %vm931_vm1, %v1017_v45  ;;  %1852 = vmatprep.subr.mxu0 %v1176_v43 }
 0x326   : > { %v2010_v49 = vpop.eup %2009  ;;  %1841 = vmatprep.mubr.msk.f32.mxu0 %vm931_vm1, %v1018_v47  ;;  %1428 = vst.msk [vmem:[%s2423_s29 + $0x30] sm:$0xff] %vm931_vm1, %v1018_v47  ;;  %1853 = vmatpush3.msra.mxu0 %v1176_v43  ;;  %v1787_v2 = vpop.f32.mrf.mxu0 }
 0x327   : > { %v1019_v51 = vmul.f32 %v2010_v49, %v2363_v4  ;;  %1854 = vmatprep.subr.mxu0 %v1175_v48  ;;  %v1150_v4 = vld [vmem:[%s2614_s4 + $0x8] sm:$0xff] }
 0x328   : > { %1855 = vmatpush3.msra.mxu0 %v1175_v48  ;;  %v810_v3 = vpop.f32.mrf.mxu0  ;;  %1916 = vmatprep.subr.mxu1 %v1150_v4 }
 0x329   : > { %1842 = vmatmul.mubr.msk.f32.gmra.mxu0 %vm931_vm1, %v1019_v51  ;;  %1429 = vst.msk [vmem:[%s2423_s29 + $0x38] sm:$0xff] %vm931_vm1, %v1019_v51  ;;  %1856 = vmatprep.subr.mxu0 %v1174_v50 }
 0x32a   : > { %1857 = vmatpush3.msra.mxu0 %v1174_v50  ;;  %1876 = vmatprep.mubr.f32.mxu0 %v780_v52 }
 0x32b   : > { %1858 = vmatprep.subr.mxu0 %v1173_v53  ;;  %1917 = vmatpush3.msra.mxu1 %v1150_v4 }
 0x32c   : > { %1859 = vmatpush3.msra.mxu0 %v1173_v53  ;;  %1918 = vmatprep.subr.mxu1 %v1149_v5 }
 0x32d   : > { %1860 = vmatprep.subr.mxu0 %v1172_v54  ;;  %1919 = vmatpush3.msra.mxu1 %v1149_v5 }
 0x32e   : > { %1861 = vmatpush3.msra.mxu0 %v1172_v54 }
 0x32f   : > { %1862 = vmatprep.subr.mxu0 %v1171_v55 }
 0x330   : > { %1863 = vmatpush3.msra.mxu0 %v1171_v55 }
 0x331   : > { %1864 = vmatprep.subr.mxu0 %v1170_v56 }
 0x332   : > { %1865 = vmatpush3.msra.mxu0 %v1170_v56 }
 0x333   : > { %1866 = vmatprep.subr.mxu0 %v1169_v58 }
 0x334   : > { %1867 = vmatpush3.msra.mxu0 %v1169_v58 }
 0x335   : > { %1868 = vmatprep.subr.mxu0 %v1168_v59 }
 0x336   : > { %1869 = vmatpush3.msra.mxu0 %v1168_v59 }
 0x337   : > { %1870 = vmatprep.subr.mxu0 %v1167_v61 }
 0x338   : > { %1871 = vmatpush3.msra.mxu0 %v1167_v61 }
 0x339   : > { %1872 = vmatprep.subr.mxu0 %v1166_v62 }
 0x33a   : > { %1873 = vmatpush3.msra.mxu0 %v1166_v62 }
 0x33b   : > { %1874 = vmatprep.subr.mxu0 %v1165_v0 }
 0x33c   : > { %1875 = vmatpush3.msra.mxu0 %v1165_v0 }
 0x33d   : > { %1877 = vmatmul.mubr.f32.vlgmr.msra.gmra.mxu0 %v1778_v46 }
 0x33e   : > { %1879 = vmatprep.mubr.f32.mxu0 %v790_v60 }
 0x341   : > { %1880 = vmatmul.mubr.f32.gmra.mxu0 %v1781_v57 }
 0x342   : > { %1882 = vmatprep.mubr.f32.mxu0 %v800_v1 }
 0x345   : > { %1883 = vmatmul.mubr.f32.gmra.mxu0 %v1784_v63 }
 0x346   : > { %1885 = vmatprep.mubr.f32.mxu0 %v810_v3 }
 0x349   : > { %1886 = vmatmul.mubr.f32.gmra.mxu0 %v1787_v2 }
 0x3dd   : > { %v1834_v6 = vpop.f32.mrf.mxu0 }
 0x3df   : > { %v1110_v7 = vpop.f32.mrf.mxu0 }
 0x3e0   : > { %1920 = vmatprep.mubr.f32.mxu1 %v1110_v7 }
 0x3e1   : > { %v1837_v8 = vpop.f32.mrf.mxu0  ;;  %1921 = vmatmul.mubr.f32.vlgmr.msra.gmra.mxu1 %v1834_v6 }
 0x3e3   : > { %v1120_v9 = vpop.f32.mrf.mxu0 }
 0x3e4   : > { %1923 = vmatprep.mubr.f32.mxu1 %v1120_v9 }
 0x3e5   : > { %v1840_v10 = vpop.f32.mrf.mxu0  ;;  %1924 = vmatmul.mubr.f32.gmra.mxu1 %v1837_v8 }
 0x3e7   : > { %v1130_v11 = vpop.f32.mrf.mxu0 }
 0x3e8   : > { %1926 = vmatprep.mubr.f32.mxu1 %v1130_v11 }
 0x3e9   : > { %v1843_v12 = vpop.f32.mrf.mxu0  ;;  %1927 = vmatmul.mubr.f32.gmra.mxu1 %v1840_v10 }
 0x3eb   : > { %v1140_v13 = vpop.f32.mrf.mxu0 }
 0x3ec   : > { %1929 = vmatprep.mubr.f32.mxu1 %v1140_v13 }
 0x3ed   : > { %1930 = vmatmul.mubr.f32.gmra.mxu1 %v1843_v12 }
 0x3ee   : > { %2024 = shalt.err (!%p2021_p3)
}
 0x3ef   : > { %s2025_s29 = scalar_lea.hbm %s2513_s16, 1024  ;;  %s2029_s15 = scalar_lea.hbm %s2617_s7, 2048 }
 0x3f0   : > { %p2026_p4 = scmp.ne.s32.totalorder %s2513_s16, %s2025_s29  ;;  %p2030_p9 = scmp.lt.s32.totalorder %s2513_s16, %s2617_s7 }
 0x3f1   : > { %p2031_p10 = scmp.lt.s32.totalorder %s2029_s15, %s2025_s29 }
 0x3f2   : > { %p2027_p7 = pnand %p2026_p4, %p2186_p5 }
 0x3f3   : > { %p2032_p11 = por %p2031_p10, %p2030_p9 }
 0x3f4   : > { %p2028_p8 = pneg %p2027_p7 }
 0x3f6   : > { %p2033_p12 = pnand %p2032_p11, %p2028_p8 }
 0x3f8   : > { %2036 = shalt.err (!%p2033_p12)
}
 0x3f9   : > { %s2105_s19 = smov 128   ;;  %s2106_s13 = smov 8   ;;  %v1631_v19 = vld [vmem:[%s2615_s5] ss:$0 sm:$0xff] }
 0x3fa   : > { %1933 = dma.vmem_to_hbm [thread:$0]  (%p2186_p5), %s2516_s17, 1024, %s2513_s16, %s1436_s18, %s2105_s19, %s2105_s19, %s2106_s13  }
 0x3fb   : > { %s2549_s16 = scalar_lea.vmem [#allocation2], %s1584_s23  ;;  %s2621_s17 = sshll.u32 %s2169_s28, 10 }
 0x3fc   : > { %s1449_s23 = sshll.u32 %s2549_s16, 4  ;;  %s2564_s8 = scalar_lea.hbm %s2616_s6, %s2621_s17  ;;  %s2566_s23 = int_to_ptr.vmem [resolvable:$true] %s1449_s23 }
 0x3fd   : > { %v1878_v14 = vpop.f32.mrf.mxu0  ;;  %s1431_s14 = scalar_lea.sflag [#allocation3], %s2416_s22  ;;  %s2037_s15 = scalar_lea.vmem %s2566_s23, 1024 }
 0x3fe   : > { %p2038_p13 = scmp.ne.s32.totalorder %s2566_s23, %s2037_s15  ;;  %s2107_s20 = smov [#allocation2]  }
 0x3ff   : > { %v1247_v15 = vpop.f32.mrf.mxu0  ;;  %s2041_s9 = sshll.u32 %s2107_s20, 4  ;;  %s2042_s9 = int_to_ptr.vmem [resolvable:$false] %s2041_s9 }
 0x400   : > { %p2039_p0 = pnand %p2038_p13, %p2186_p5  ;;  %s2043_s28 = scalar_lea.vmem %s2042_s9, 2048 }
 0x401   : > { %v1881_v16 = vpop.f32.mrf.mxu0  ;;  %p2044_p2 = scmp.lt.s32.totalorder %s2566_s23, %s2042_s9  ;;  %p2045_p3 = scmp.lt.s32.totalorder %s2043_s28, %s2037_s15 }
 0x402   : > { %p2040_p1 = pneg %p2039_p0 }
 0x403   : > { %v1257_v17 = vpop.f32.mrf.mxu0  ;;  %p2046_p4 = por %p2045_p3, %p2044_p2 }
 0x405   : > { %v1884_v21 = vpop.f32.mrf.mxu0  ;;  %p2047_p7 = pnand %p2046_p4, %p2040_p1 }
 0x407   : > { %v1267_v29 = vpop.f32.mrf.mxu0 }
 0x409   : > { %v1887_v38 = vpop.f32.mrf.mxu0 }
 0x40b   : > { %v1277_v47 = vpop.f32.mrf.mxu0 }
 0x4a1   : > { %v1922_v18 = vpop.f32.mrf.mxu1 }
 0x4a2   : > { %v1358_v20 = vadd.f32 %v1922_v18, %v1878_v14 }
 0x4a3   : > { %v1352_v22 = vpop.f32.mrf.mxu1 }
 0x4a4   : > { %v1399_v23 = vadd.f32 %v1631_v19, %v1358_v20  ;;  %v1353_v24 = vadd.f32 %v1352_v22, %v1247_v15 }
 0x4a5   : > { %v1925_v25 = vpop.f32.mrf.mxu1 }
 0x4a6   : > { %v1407_v26 = vmax.f32 %v1399_v23, 0.0  ;;  %v1398_v27 = vadd.f32 %v1631_v19, %v1353_v24  ;;  %v1368_v28 = vadd.f32 %v1925_v25, %v1881_v16 }
 0x4a7   : > { %v1362_v30 = vpop.f32.mrf.mxu1 }
 0x4a8   : > { %1415 = vst [vmem:[%s2549_s16 + $0x8] sm:$0xff] %v1407_v26  ;;  %v1406_v31 = vmax.f32 %v1398_v27, 0.0  ;;  %v1401_v32 = vadd.f32 %v1631_v19, %v1368_v28  ;;  %v1363_v33 = vadd.f32 %v1362_v30, %v1257_v17 }
 0x4a9   : > { %v1928_v34 = vpop.f32.mrf.mxu1 }
 0x4aa   : > { %1414 = vst [vmem:[%s2549_s16] sm:$0xff] %v1406_v31  ;;  %v1409_v35 = vmax.f32 %v1401_v32, 0.0  ;;  %v1400_v36 = vadd.f32 %v1631_v19, %v1363_v33  ;;  %v1378_v37 = vadd.f32 %v1928_v34, %v1884_v21 }
 0x4ab   : > { %v1372_v39 = vpop.f32.mrf.mxu1 }
 0x4ac   : > { %1417 = vst [vmem:[%s2549_s16 + $0x18] sm:$0xff] %v1409_v35  ;;  %v1408_v40 = vmax.f32 %v1400_v36, 0.0  ;;  %v1403_v41 = vadd.f32 %v1631_v19, %v1378_v37  ;;  %v1373_v42 = vadd.f32 %v1372_v39, %v1267_v29 }
 0x4ad   : > { %v1931_v43 = vpop.f32.mrf.mxu1 }
 0x4ae   : > { %1416 = vst [vmem:[%s2549_s16 + $0x10] sm:$0xff] %v1408_v40  ;;  %v1411_v44 = vmax.f32 %v1403_v41, 0.0  ;;  %v1402_v45 = vadd.f32 %v1631_v19, %v1373_v42  ;;  %v1388_v46 = vadd.f32 %v1931_v43, %v1887_v38 }
 0x4af   : > { %v1382_v48 = vpop.f32.mrf.mxu1 }
 0x4b0   : > { %1419 = vst [vmem:[%s2549_s16 + $0x28] sm:$0xff] %v1411_v44  ;;  %v1410_v49 = vmax.f32 %v1402_v45, 0.0  ;;  %v1405_v50 = vadd.f32 %v1631_v19, %v1388_v46  ;;  %v1383_v51 = vadd.f32 %v1382_v48, %v1277_v47 }
 0x4b2   : > { %1418 = vst [vmem:[%s2549_s16 + $0x20] sm:$0xff] %v1410_v49  ;;  %v1413_v52 = vmax.f32 %v1405_v50, 0.0  ;;  %v1404_v53 = vadd.f32 %v1631_v19, %v1383_v51 }
 0x4b4   : > { %1421 = vst [vmem:[%s2549_s16 + $0x38] sm:$0xff] %v1413_v52  ;;  %v1412_v54 = vmax.f32 %v1404_v53, 0.0 }
 0x4b6   : > { %1420 = vst [vmem:[%s2549_s16 + $0x30] sm:$0xff] %v1412_v54 }
 0x4b7   : > { %2050 = shalt.err (!%p2047_p7)
}
 0x4b8   : > { %s2051_s21 = scalar_lea.hbm %s2564_s8, 1024  ;;  %s2055_s17 = scalar_lea.hbm %s2616_s6, 2048 }
 0x4b9   : > { %p2052_p8 = scmp.ne.s32.totalorder %s2564_s8, %s2051_s21  ;;  %p2056_p11 = scmp.lt.s32.totalorder %s2564_s8, %s2616_s6 }
 0x4ba   : > { %p2057_p12 = scmp.lt.s32.totalorder %s2055_s17, %s2051_s21 }
 0x4bb   : > { %p2053_p9 = pnand %p2052_p8, %p2186_p5 }
 0x4bc   : > { %p2058_p13 = por %p2057_p12, %p2056_p11 }
 0x4bd   : > { %p2054_p10 = pneg %p2053_p9 }
 0x4bf   : > { %p2059_p0 = pnand %p2058_p13, %p2054_p10 }
 0x4c1   : > { %2062 = shalt.err (!%p2059_p0)
}
 0x4c2   : > { %1932 = dma.vmem_to_hbm [thread:$0]  (%p2186_p5), %s2566_s23, 1024, %s2564_s8, %s1431_s14, %s2105_s19, %s2105_s19, %s2106_s13  }
 0x4c3 PF: > { %p1943_p1 = scmp.ge.s32.totalorder %s2101_s27, 2  ;;  %s1480_s15 = sand.u32 1, %s2089_s24  }
 0x4c4   : > { %s1481_s20 = scalar_lea.sflag [#allocation3], %s1480_s15 }
 0x4c5   : > { %p1937_p2 = pnand %p1943_p1, %p2190_p6 }
 0x4c7   : > { %p1938_p3 = pneg %p1937_p2 }
 0x4c9   : > { %2080 = dma.done.wait (%p1938_p3), %s1481_s20, 1024  }
 0x4ca   : > { %2082 = vsyncadd (%p1938_p3), %s1481_s20, 4294966272  ;;  %s1490_s9 = scalar_lea.sflag [#allocation5], %s1480_s15 }
 0x4cb   : > { %2084 = dma.done.wait (%p1938_p3), %s1490_s9, 1024  }
 0x4cc   : > { %2086 = vsyncadd (%p1938_p3), %s1490_s9, 4294966272  ;;  %p21_p5 = scmp.ge.s32.totalorder %s2173_s30, 4   ;;  %s2622_s24 = smov %s2093_s25 }
 0x4cd   : > { %s2623_s25 = smov %s2097_s26  ;;  %s2624_s26 = smov %s2184_s10 }
 0x4ce   : > { %s2625_s27 = smov %s2173_s30  ;;  %23 = sbr.rel (!%p21_p5) target bundleno = 5 (0x5), region = 102 }
 0x4d3   :  { %1495 = vsyncpa [#allocation3], 1 }
 0x4d4   :  { %1497 = vsyncpa [#allocation3 + $0x1], 1 }
 0x4d5   :  { %1498 = vsyncpa [#allocation5], 1 }
 0x4d6   :  { %1500 = vsyncpa [#allocation5 + $0x1], 1 }

</bundles_post_ra>
